<compile_context>
chip_gen: v7x
topology: tpu7x:2x2x1
jax: 0.10.0
libtpu: 0.0.40
codegen_flags: <defaults>
</compile_context>

<pallas_src>
import functools

import jax
import jax.numpy as jnp
from jax import lax
from jax.experimental import pallas as pl
from jax.experimental.pallas import tpu as pltpu


_TM_CAP = 4096                      # ~2 MB per (tm, 128) f32 block
_VMEM_LIMIT = 48 * 1024 * 1024      # <= v7x 64 MiB physical; fine on v5e/v6e


# --------------------------- Pallas kernels ---------------------------

def _stats_kernel(x_ref, xtx_ref, colsum_ref):
    """Accumulate uncentered Gram (X^T X) and column sum in one HBM pass."""
    @pl.when(pl.program_id(1) == 0)
    def _():
        xtx_ref[...] = jnp.zeros_like(xtx_ref)
        colsum_ref[...] = jnp.zeros_like(colsum_ref)

    x = x_ref[...]
    # X^T X as a contraction over dim 0 of both operands -> MXU consumes the
    # transposed-LHS form natively (no explicit transpose).
    xtx_ref[...] += lax.dot_general(
        x, x, dimension_numbers=(((0,), (0,)), ((), ())),
        preferred_element_type=jnp.float32)
    colsum_ref[...] += jnp.sum(x, axis=0, keepdims=True)


def _noise_kernel(x_ref, coeff_ref, svt_ref, sel_ref, *out_refs, emit_noise):
    """noise = coeff @ scaled_Vt ; noisy = x + noise ; lane-dense energy."""
    if emit_noise:
        noisy_ref, noise_ref, energy_ref = out_refs
    else:
        noisy_ref, energy_ref = out_refs
        noise_ref = None

    # Eigenvalue / noise-scale factors are pre-folded into svt (once, in
    # JAX), so the projection is a single MXU matmul on the packed view.
    noise = jnp.dot(coeff_ref[...], svt_ref[...],
                    preferred_element_type=jnp.float32)

    noisy_ref[...] = x_ref[...] + noise
    if noise_ref is not None:
        noise_ref[...] = noise

    # Per-original-patch energy, emitted lane-dense as a (pack, tm) block.
    # sel (pack, Dp) selects each packed half; contraction over the lane axis
    # runs on the (otherwise idle) MXU and avoids masked narrow stores.
    nsq = noise * noise
    energy_ref[...] = lax.dot_general(
        sel_ref[...], nsq, dimension_numbers=(((1,), (1,)), ((), ())),
        preferred_element_type=jnp.float32)


# --------------------------- helpers ---------------------------

def _round_up(x, m):
    return ((x + m - 1) // m) * m


def _choose_pack(m, d):
    """Smallest row-pack factor that makes the lane dim a multiple of 128."""
    if d % 128 == 0:
        return 1
    for pack in (2, 4, 8):
        if m % pack == 0 and (pack * d) % 128 == 0 and pack * d <= 1024:
            return pack
    return 1


def _choose_tiling(mp):
    """Row tile (capped, sublane-aligned) + zero-padded row extent."""
    if mp <= _TM_CAP:
        tm = max(_round_up(mp, 8), 8)
        return tm, tm
    return _TM_CAP, _round_up(mp, _TM_CAP)


# --------------------------- pallas_call wrappers ---------------------------

def _patch_stats(x, tm):
    """One streaming pass over the packed (Mp_pad, Dp) matrix."""
    mp_pad, dp = x.shape
    nblk = mp_pad // tm
    # Leading "parallel" axis so both TensorCores contribute partial sums on
    # multi-TC chips (v7x); harmless (serial) on single-TC v5e/v6e.
    split = 2 if (nblk % 2 == 0 and nblk >= 2) else 1
    bps = nblk // split

    xtx_p, colsum_p = pl.pallas_call(
        _stats_kernel,
        out_shape=(jax.ShapeDtypeStruct((split, dp, dp), jnp.float32),
                   jax.ShapeDtypeStruct((split, 1, dp), jnp.float32)),
        grid_spec=pltpu.PrefetchScalarGridSpec(
            num_scalar_prefetch=0,
            grid=(split, bps),
            in_specs=[pl.BlockSpec((tm, dp), lambda s, i: (s * bps + i, 0))],
            out_specs=[pl.BlockSpec((None, dp, dp), lambda s, i: (s, 0, 0)),
                       pl.BlockSpec((None, 1, dp), lambda s, i: (s, 0, 0))],
        ),
        compiler_params=pltpu.CompilerParams(
            dimension_semantics=("parallel", "arbitrary"),
            vmem_limit_bytes=_VMEM_LIMIT),
    )(x)
    return jnp.sum(xtx_p, axis=0), jnp.sum(colsum_p, axis=0)


def _apply_pca_noise(x, coeff, svt, sel, tm, *, return_noise):
    """Fused: projection -> add -> lane-dense per-patch energy."""
    mp_pad, dp = x.shape
    pack = sel.shape[0]
    nblk = mp_pad // tm

    out_shapes = [jax.ShapeDtypeStruct((mp_pad, dp), jnp.float32)]
    out_specs = [pl.BlockSpec((tm, dp), lambda i: (i, 0))]
    if return_noise:
        out_shapes.append(jax.ShapeDtypeStruct((mp_pad, dp), jnp.float32))
        out_specs.append(pl.BlockSpec((tm, dp), lambda i: (i, 0)))
    out_shapes.append(jax.ShapeDtypeStruct((pack, mp_pad), jnp.float32))
    out_specs.append(pl.BlockSpec((pack, tm), lambda i: (0, i)))

    kernel = functools.partial(_noise_kernel, emit_noise=return_noise)

    outs = pl.pallas_call(
        kernel,
        out_shape=tuple(out_shapes),
        grid_spec=pltpu.PrefetchScalarGridSpec(
            num_scalar_prefetch=0,
            grid=(nblk,),
            in_specs=[pl.BlockSpec((tm, dp), lambda i: (i, 0)),
                      pl.BlockSpec((tm, dp), lambda i: (i, 0)),
                      pl.BlockSpec((dp, dp), lambda i: (0, 0)),
                      pl.BlockSpec((pack, dp), lambda i: (0, 0))],
            out_specs=out_specs,
        ),
        compiler_params=pltpu.CompilerParams(
            dimension_semantics=("parallel",),
            vmem_limit_bytes=_VMEM_LIMIT),
    )(x, coeff, svt, sel)

    if return_noise:
        noisy_pk, noise_pk, energy_rows = outs
    else:
        noisy_pk, energy_rows = outs
        noise_pk = None
    return noisy_pk, noise_pk, energy_rows


# --------------------------- top-level forward ---------------------------

def svd_patch_pca_noise(x, key, *, patch_size=4, noise_scale=0.5,
                        training=True, return_patches=False):
    """JAX/Pallas port of UniformSVDPatchPCANoise.forward.

    Returns (noisy_image, patch_weights) or
            (noisy_image, pca_noise_image, patch_weights) if return_patches.
    """
    if not training:
        return x

    B, C, H, W = x.shape
    p = patch_size
    assert H % p == 0 and W % p == 0, \
        'Image dimensions must be divisible by patch size'
    nh, nw = H // p, W // p
    N = nh * nw
    D = C * p * p
    M = B * N

    # patchify — same flattening order as torch unfold(2).unfold(3).permute.
    xp = (x.astype(jnp.float32)
           .reshape(B, C, nh, p, nw, p)
           .transpose(0, 2, 4, 1, 3, 5)
           .reshape(M, D))

    # ---- lane-dense packed view (free reshape, no extra HBM bytes) ----
    pack = _choose_pack(M, D)
    Dp = pack * D
    Mp = M // pack
    tm, mp_pad = _choose_tiling(Mp)

    xpk = xp.reshape(Mp, Dp)
    if mp_pad != Mp:
        xpk = jnp.pad(xpk, ((0, mp_pad - Mp), (0, 0)))

    # ---- statistics: one fused Pallas pass over the packed matrix ----
    xtx_pk, colsum_pk = _patch_stats(xpk, tm)
    blocks = xtx_pk.reshape(pack, D, pack, D)
    xtx = sum(blocks[k, :, k, :] for k in range(pack))          # fold halves
    colsum = colsum_pk.reshape(pack, D).sum(axis=0, keepdims=True)

    mean = colsum / M                                   # (1, D)
    # centered^T centered = X^T X - M * mean mean^T  (D x D, done in JAX).
    # TODO(synk): this squares the condition number vs SVD of the centered
    # matrix; acceptable here since only a noise basis is needed.
    gram = xtx - M * (mean.T @ mean)
    gram = 0.5 * (gram + gram.T)                        # symmetrize for eigh

    # ---- spectral decomposition (plain JAX; no Pallas SVD/eigh) ----
    eig_vals, eig_vecs = jnp.linalg.eigh(gram)          # ascending
    order = jnp.argsort(eig_vals)[::-1]                 # descending
    eig_vals = eig_vals[order] / (M - 1 + 1e-6)
    eig_vecs = eig_vecs[:, order]                       # (D, D) columns

    # PyTorch slices away components with eig_val <= 1e-6; we mask them
    # (zero noise contribution) so shapes stay static — same semantics.
    valid = (eig_vals > 1e-6).astype(jnp.float32)
    scale = jnp.sqrt(jnp.maximum(eig_vals, 0.0)) * noise_scale * valid  # (D,)
    scaled_vt = scale[:, None] * eig_vecs.T             # (D, D)
    # Block-diagonal projection for the packed view (== scaled_vt if pack==1).
    svt_pk = jnp.kron(jnp.eye(pack, dtype=jnp.float32), scaled_vt)      # (Dp, Dp)
    # Selector rows: row k sums the squared noise of packed half k.
    sel = jnp.repeat(jnp.eye(pack, dtype=jnp.float32), D, axis=1)       # (pack, Dp)

    # Gaussian coefficients, exactly matching the reference:
    #   coeff = (torch.randn(M, D) - 0.5) * 2
    # Drawn in JAX (portable / interpret-safe / tiling-independent) and
    # streamed into the kernel.
    coeff = (jax.random.normal(key, (M, D), dtype=jnp.float32) - 0.5) * 2.0
    coeff_pk = coeff.reshape(Mp, Dp)
    if mp_pad != Mp:
        coeff_pk = jnp.pad(coeff_pk, ((0, mp_pad - Mp), (0, 0)))

    # ---- fused noise projection + add + energy (Pallas) ----
    noisy_pk, noise_pk, energy_rows = _apply_pca_noise(
        xpk, coeff_pk, svt_pk, sel, tm, return_noise=return_patches)

    noisy_p = noisy_pk[:Mp].reshape(M, D)
    energy = energy_rows[:, :Mp].T.reshape(M)           # per-patch energy
    max_e = jnp.max(energy)
    # Guard the 0/0 degenerate case (all components masked / constant input).
    patch_weights = (energy / jnp.where(max_e > 0.0, max_e, 1.0)).reshape(B, N)

    def unpatch(flat):
        return (flat.reshape(B, nh, nw, C, p, p)
                    .transpose(0, 3, 1, 4, 2, 5)
                    .reshape(B, C, H, W))

    noisy_image = unpatch(noisy_p).astype(x.dtype)
    if return_patches:
        noise_p = noise_pk[:Mp].reshape(M, D)
        noise_image = unpatch(noise_p).astype(x.dtype)
        return noisy_image, noise_image, patch_weights
    return noisy_image, patch_weights


# --------------------------- demo ---------------------------

if __name__ == "__main__":
    key = jax.random.PRNGKey(0)
    k_img, k_noise = jax.random.split(key)

    B, C, H, W = 2, 4, 16, 16
    x = jax.random.normal(k_img, (B, C, H, W), dtype=jnp.float32)

    # return_patches=True path (writes the pca_noise output stream).
    noisy, pca_noise_img, patch_w = svd_patch_pca_noise(
        x, k_noise, patch_size=4, noise_scale=0.5,
        training=True, return_patches=True)

    # return_patches=False path (lite kernel: no pca_noise HBM write).
    noisy2, patch_w2 = svd_patch_pca_noise(
        x, k_noise, patch_size=4, noise_scale=0.5,
        training=True, return_patches=False)

    jax.block_until_ready((noisy, pca_noise_img, patch_w, noisy2, patch_w2))

    assert noisy.shape == (B, C, H, W)
    assert pca_noise_img.shape == (B, C, H, W)
    assert patch_w.shape == (B, (H // 4) * (W // 4))
    assert noisy2.shape == (B, C, H, W)
    assert bool(jnp.all(jnp.isfinite(noisy)))
    assert bool(jnp.all(jnp.isfinite(patch_w)))
    # noisy = x + noise must hold exactly.
    assert bool(jnp.allclose(noisy, x + pca_noise_img, atol=1e-5))
    # Both variants use the same key -> identical noise realization.
    assert bool(jnp.allclose(noisy, noisy2))
    assert bool(jnp.allclose(patch_w, patch_w2))
    # Weights are normalized to [0, 1] with max == 1.
    assert bool(jnp.isclose(jnp.max(patch_w), 1.0, atol=1e-5))
    print("KERNEL_OK")
</pallas_src>

<mosaic_0001>
module attributes {stable_mosaic.version = 11 : i64} {
  func.func @_stats_kernel(%arg0: i32, %arg1: i32, %arg2: memref<16x128xf32, #tpu.memory_space<vmem>>, %arg3: memref<1x128x128xf32, #tpu.memory_space<vmem>>, %arg4: memref<1x1x128xf32, #tpu.memory_space<vmem>>) attributes {dimension_semantics = [#tpu.dimension_semantics<parallel>, #tpu.dimension_semantics<arbitrary>], iteration_bounds = array<i64: 1, 1>, scalar_prefetch = 0 : i64, scratch_operands = 0 : i64, tpu.core_type = #tpu.core_type<tc>, window_params = [{transform_indices = @transform_0, window_bounds = array<i64: 16, 128>}, {transform_indices = @transform_1, window_bounds = array<i64: 1, 128, 128>}, {transform_indices = @transform_2, window_bounds = array<i64: 1, 1, 128>}]} {
    %c0_i32 = arith.constant 0 : i32
    %0 = arith.cmpi eq, %arg1, %c0_i32 : i32
    %1 = arith.extui %0 : i1 to i32
    %c0_i32_0 = arith.constant 0 : i32
    %2 = arith.cmpi ne, %1, %c0_i32_0 : i32
    scf.if %2 {
      %cst_15 = arith.constant 0.000000e+00 : f32
      %19 = vector.broadcast %cst_15 : f32 to vector<128x128xf32>
      %c0_16 = arith.constant 0 : index
      %c0_17 = arith.constant 0 : index
      %c0_18 = arith.constant 0 : index
      %20 = vector.load %arg3[%c0_16, %c0_17, %c0_18] : memref<1x128x128xf32, #tpu.memory_space<vmem>>, vector<1x128x128xf32>
      %21 = vector.shape_cast %20 : vector<1x128x128xf32> to vector<128x128xf32>
      %22 = vector.shape_cast %19 : vector<128x128xf32> to vector<1x128x128xf32>
      tpu.vector_store %arg3[%c0_16, %c0_17, %c0_18], %22 {strides = array<i32>} : memref<1x128x128xf32, #tpu.memory_space<vmem>>, vector<1x128x128xf32>,
      %cst_19 = arith.constant 0.000000e+00 : f32
      %23 = vector.broadcast %cst_19 : f32 to vector<1x128xf32>
      %c0_20 = arith.constant 0 : index
      %c0_21 = arith.constant 0 : index
      %c0_22 = arith.constant 0 : index
      %24 = vector.load %arg4[%c0_20, %c0_21, %c0_22] : memref<1x1x128xf32, #tpu.memory_space<vmem>>, vector<1x1x128xf32>
      %25 = vector.shape_cast %24 : vector<1x1x128xf32> to vector<1x128xf32>
      %26 = vector.shape_cast %23 : vector<1x128xf32> to vector<1x1x128xf32>
      tpu.vector_store %arg4[%c0_20, %c0_21, %c0_22], %26 {strides = array<i32>} : memref<1x1x128xf32, #tpu.memory_space<vmem>>, vector<1x1x128xf32>,
    } else {
    }
    %c0 = arith.constant 0 : index
    %c0_1 = arith.constant 0 : index
    %3 = vector.load %arg2[%c0, %c0_1] : memref<16x128xf32, #tpu.memory_space<vmem>>, vector<16x128xf32>
    %c0_2 = arith.constant 0 : index
    %c0_3 = arith.constant 0 : index
    %c0_4 = arith.constant 0 : index
    %4 = vector.load %arg3[%c0_2, %c0_3, %c0_4] : memref<1x128x128xf32, #tpu.memory_space<vmem>>, vector<1x128x128xf32>
    %5 = vector.shape_cast %4 : vector<1x128x128xf32> to vector<128x128xf32>
    %cst = arith.constant dense<0.000000e+00> : vector<128x128xf32>
    %6 = tpu.matmul %3, %3, %cst {dimension_numbers = #tpu.dot_dimension_numbers<[0], [0], [1], [1], [0, 1, 1, 1], [], []>} : vector<16x128xf32>, vector<16x128xf32>, vector<128x128xf32> -> vector<128x128xf32>
    %7 = arith.addf %5, %6 : vector<128x128xf32>
    %c0_5 = arith.constant 0 : index
    %c0_6 = arith.constant 0 : index
    %c0_7 = arith.constant 0 : index
    %8 = vector.load %arg3[%c0_5, %c0_6, %c0_7] : memref<1x128x128xf32, #tpu.memory_space<vmem>>, vector<1x128x128xf32>
    %9 = vector.shape_cast %8 : vector<1x128x128xf32> to vector<128x128xf32>
    %10 = vector.shape_cast %7 : vector<128x128xf32> to vector<1x128x128xf32>
    tpu.vector_store %arg3[%c0_5, %c0_6, %c0_7], %10 {strides = array<i32>} : memref<1x128x128xf32, #tpu.memory_space<vmem>>, vector<1x128x128xf32>,
    %c0_8 = arith.constant 0 : index
    %c0_9 = arith.constant 0 : index
    %c0_10 = arith.constant 0 : index
    %11 = vector.load %arg4[%c0_8, %c0_9, %c0_10] : memref<1x1x128xf32, #tpu.memory_space<vmem>>, vector<1x1x128xf32>
    %12 = vector.shape_cast %11 : vector<1x1x128xf32> to vector<1x128xf32>
    %cst_11 = arith.constant dense<0.000000e+00> : vector<128xf32>
    %13 = vector.multi_reduction <add>, %3, %cst_11 [0] : vector<16x128xf32> to vector<128xf32>
    %14 = vector.shape_cast %13 : vector<128xf32> to vector<1x128xf32>
    %15 = arith.addf %12, %14 : vector<1x128xf32>
    %c0_12 = arith.constant 0 : index
    %c0_13 = arith.constant 0 : index
    %c0_14 = arith.constant 0 : index
    %16 = vector.load %arg4[%c0_12, %c0_13, %c0_14] : memref<1x1x128xf32, #tpu.memory_space<vmem>>, vector<1x1x128xf32>
    %17 = vector.shape_cast %16 : vector<1x1x128xf32> to vector<1x128xf32>
    %18 = vector.shape_cast %15 : vector<1x128xf32> to vector<1x1x128xf32>
    tpu.vector_store %arg4[%c0_12, %c0_13, %c0_14], %18 {strides = array<i32>} : memref<1x1x128xf32, #tpu.memory_space<vmem>>, vector<1x1x128xf32>,
    return
  }
  func.func @transform_0(%arg0: i32, %arg1: i32) -> (i32, i32) {
    %c1_i32 = arith.constant 1 : i32
    %0 = arith.muli %arg0, %c1_i32 : i32
    %1 = arith.addi %0, %arg1 : i32
    %c0_i32 = arith.constant 0 : i32
    %c0_i32_0 = arith.constant 0 : i32
    return %1, %c0_i32 : i32, i32
  }
  func.func @transform_1(%arg0: i32, %arg1: i32) -> (i32, i32, i32) {
    %c0_i32 = arith.constant 0 : i32
    %c0_i32_0 = arith.constant 0 : i32
    %c0_i32_1 = arith.constant 0 : i32
    return %arg0, %c0_i32, %c0_i32_0 : i32, i32, i32
  }
  func.func @transform_2(%arg0: i32, %arg1: i32) -> (i32, i32, i32) {
    %c0_i32 = arith.constant 0 : i32
    %c0_i32_0 = arith.constant 0 : i32
    %c0_i32_1 = arith.constant 0 : i32
    return %arg0, %c0_i32, %c0_i32_0 : i32, i32, i32
  }
}

</mosaic_0001>

<bundles_post_ra>
// kernel: tpu_custom_call.1
= control target key start
LH: loop header
LB: loop body
LE: loop exit
PB: predicated region body
PF: predicated region fallthrough
CT: control target
= control target key end

     0   :  { %8 = vsyncpa [#allocation3], 0  ;;  %s595_s0 = inlined_call_operand.hbm [shape: f32[16,128], index: 0, kind: input, shape index: {}]   ;;  %s596_s1 = inlined_call_operand.hbm [shape: f32[1,128,128], index: 1, kind: output, shape index: {0}]   ;;  %s597_s2 = inlined_call_operand.hbm [shape: f32[1,1,128], index: 2, kind: output, shape index: {1}]  }
   0x1   :  { %9 = vsyncpa [#allocation4], 0 }
   0x2   :  { %10 = vsyncpa [#allocation7], 0  ;;  %s516_s9 = smov [#allocation2]   ;;  %s444_s13 = scalar_lea.hbm %s595_s0, 256 }
   0x3   :  { %s20_s10 = sshll.u32 %s516_s9, 4  ;;  %p445_p0 = scmp.ne.s32.totalorder %s595_s0, %s444_s13  ;;  %s21_s10 = int_to_ptr.vmem [resolvable:$true] %s20_s10 }
   0x4   :  { %p448_p1 = scmp.lt.u32.totalorder %s444_s13, %s595_s0 }
   0x6   :  { %p450_p2 = pnand %p448_p1, %p445_p0 }
   0x8   :  { %453 = shalt.err (!%p450_p2)
}
   0x9   :  { %s454_s18 = scalar_lea.vmem %s21_s10, 256  ;;  %p459_p4 = scmp.lt.s32.totalorder %s21_s10, %s21_s10 }
   0xa   :  { %p455_p3 = scmp.ne.s32.totalorder %s21_s10, %s454_s18  ;;  %p460_p5 = scmp.lt.s32.totalorder %s454_s18, %s454_s18 }
   0xc   :  { %p461_p6 = por %p460_p5, %p459_p4 }
   0xe   :  { %p462_p7 = pnand %p461_p6, %p455_p3 }
  0x10   :  { %465 = shalt.err (!%p462_p7)
}
  0x11   :  { %s517_s19 = smov 128   ;;  %s518_s20 = smov 8  }
  0x12   :  { %26 = dma.hbm_to_vmem [thread:$0]  %s595_s0, 256, %s21_s10, [#allocation3], %s517_s19, %s517_s19, %s518_s20  }
  0x13   :  { %510 = dma.done.wait [#allocation3], 256  }
  0x14   :  { %511 = vsyncadd [#allocation3], 4294967040  ;;  %v53_v0 = vld [vmem:[#allocation2] sm:$0xff]  ;;  %v54_v1 = vld [vmem:[#allocation2 + $0x8] sm:$0xff]  ;;  %v519_v4 = vmov 0.0   ;;  %vm103_vm0 = vcmask 130048  }
  0x15   :  { %71 = vxpose.xlu0.b32.start [1/2] (short) %v53_v0, 128  ;;  %v432_v2 = vpack.c.bf16 %v54_v1, %v53_v0  ;;  %v330_v3 = vadd.f32 %v54_v1, %v53_v0  ;;  %52 = vst [vmem:[#allocation6] sm:$0x1] %v519_v4  ;;  %s520_s0 = smov [#allocation6]  }
  0x16   :  { %s357_s23 = sshll.u32 %s520_s0, 4  ;;  %s358_s23 = int_to_ptr.vmem [resolvable:$true] %s357_s23 }
  0x17   :  { %433 = vmatprep.subr.bf16.mxu0 %v432_v2  ;;  %436 = vmatprep.subr.bf16.mxu1 %v432_v2  ;;  %v331_v21 = vrot.slane %v330_v3, 4  ;;  %s466_s24 = scalar_lea.vmem %s358_s23, 16  ;;  %s470_s25 = scalar_lea.vmem %s358_s23, 32 }
  0x18   :  { %435 = vmatpush3.bf16.msra.mxu0 %v432_v2  ;;  %437 = vmatpush3.bf16.msra.mxu1 %v432_v2  ;;  %p467_p8 = scmp.ne.s32.totalorder %s358_s23, %s466_s24  ;;  %p471_p9 = scmp.lt.s32.totalorder %s358_s23, %s358_s23 }
  0x19   :  { %72 = vxpose.xlu0.b32.end [2/2] (short) %v54_v1, 128  ;;  %v332_v22 = vadd.f32 %v331_v21, %v330_v3  ;;  %p472_p10 = scmp.lt.s32.totalorder %s470_s25, %s466_s24 }
  0x1b   :  { %v333_v23 = vrot.slane %v332_v22, 2  ;;  %p473_p11 = por %p472_p10, %p471_p9 }
  0x1c   :  { %v329_v27 = vld [vmem:[#allocation6] sm:$0x1] }
  0x1d   :  { %v334_v24 = vadd.f32 %v333_v23, %v332_v22  ;;  %p474_p12 = pnand %p473_p11, %p467_p8 }
  0x1f   :  { %v335_v25 = vrot.slane %v334_v24, 1 }
  0x21   :  { %v336_v26 = vadd.f32 %v335_v25, %v334_v24 }
  0x23   :  { %v337_v28 = vadd.f32 %v336_v26, %v329_v27 }
  0x25   :  { %338 = vst [vmem:[#allocation6] sm:$0x1] %v337_v28 }
  0x95   :  { %v87_v5 = vpop.trf.xlu0 }
  0x96   :  { %408 = vmatprep.mubr.msk.f32.mxu0 %vm103_vm0, %v87_v5 }
  0x99   :  { %v88_v6 = vpop.trf.xlu0 }
  0x9a   :  { %409 = vmatmul.mubr.msk.f32.vlgmr.msra.gmra.mrb[0].mxu0 %vm103_vm0, %v88_v6 }
  0x9d   :  { %v89_v7 = vpop.trf.xlu0 }
  0x9e   :  { %411 = vmatprep.mubr.msk.f32.mxu0 %vm103_vm0, %v89_v7 }
  0xa1   :  { %v90_v8 = vpop.trf.xlu0 }
  0xa2   :  { %412 = vmatmul.mubr.msk.f32.gmra.mrb[2].mxu0 %vm103_vm0, %v90_v8 }
  0xa5   :  { %v91_v9 = vpop.trf.xlu0 }
  0xa6   :  { %414 = vmatprep.mubr.msk.f32.mxu0 %vm103_vm0, %v91_v9 }
  0xa9   :  { %v92_v10 = vpop.trf.xlu0 }
  0xaa   :  { %415 = vmatmul.mubr.msk.f32.gmra.mrb[4].mxu0 %vm103_vm0, %v92_v10 }
  0xad   :  { %v93_v11 = vpop.trf.xlu0 }
  0xae   :  { %417 = vmatprep.mubr.msk.f32.mxu0 %vm103_vm0, %v93_v11 }
  0xb1   :  { %v94_v12 = vpop.trf.xlu0 }
  0xb2   :  { %418 = vmatmul.mubr.msk.f32.gmra.mrb[6].mxu0 %vm103_vm0, %v94_v12 }
  0xb5   :  { %v95_v13 = vpop.trf.xlu0 }
  0xb6   :  { %420 = vmatprep.mubr.msk.f32.mxu1 %vm103_vm0, %v95_v13 }
  0xb9   :  { %v96_v14 = vpop.trf.xlu0 }
  0xba   :  { %421 = vmatmul.mubr.msk.f32.vlgmr.msra.gmra.mrb[0].mxu1 %vm103_vm0, %v96_v14 }
  0xbd   :  { %v97_v15 = vpop.trf.xlu0 }
  0xbe   :  { %423 = vmatprep.mubr.msk.f32.mxu1 %vm103_vm0, %v97_v15 }
  0xc1   :  { %v98_v16 = vpop.trf.xlu0 }
  0xc2   :  { %424 = vmatmul.mubr.msk.f32.gmra.mrb[2].mxu1 %vm103_vm0, %v98_v16 }
  0xc5   :  { %v99_v17 = vpop.trf.xlu0 }
  0xc6   :  { %426 = vmatprep.mubr.msk.f32.mxu1 %vm103_vm0, %v99_v17 }
  0xc9   :  { %v100_v18 = vpop.trf.xlu0 }
  0xca   :  { %427 = vmatmul.mubr.msk.f32.gmra.mrb[4].mxu1 %vm103_vm0, %v100_v18 }
  0xcd   :  { %v101_v19 = vpop.trf.xlu0 }
  0xce   :  { %429 = vmatprep.mubr.msk.f32.mxu1 %vm103_vm0, %v101_v19 }
  0xd1   :  { %v102_v20 = vpop.trf.xlu0 }
  0xd2   :  { %430 = vmatmul.mubr.msk.f32.gmra.mrb[6].mxu1 %vm103_vm0, %v102_v20 }
  0xd3   :  { %477 = shalt.err (!%p474_p12)
}
  0xd4   :  { %s478_s28 = scalar_lea.hbm %s597_s2, 16 }
  0xd5   :  { %p479_p13 = scmp.ne.s32.totalorder %s597_s2, %s478_s28  ;;  %p482_p0 = scmp.lt.u32.totalorder %s478_s28, %s597_s2 }
  0xd7   :  { %p484_p1 = pnand %p482_p0, %p479_p13 }
  0xd9   :  { %487 = shalt.err (!%p484_p1)
}
  0xda   :  { %360 = dma.vmem_to_hbm [thread:$0]  %s358_s23, 16, %s597_s2, [#allocation7]  }
  0xdb   :  { %s521_s2 = smov [#allocation5]  }
  0xdc   :  { %s344_s7 = sshll.u32 %s521_s2, 4  ;;  %s345_s7 = int_to_ptr.vmem [resolvable:$true] %s344_s7 }
  0xdd   :  { %s488_s8 = scalar_lea.vmem %s345_s7, 2048  ;;  %p493_p3 = scmp.lt.s32.totalorder %s345_s7, %s345_s7 }
  0xde   :  { %p489_p2 = scmp.ne.s32.totalorder %s345_s7, %s488_s8  ;;  %p494_p4 = scmp.lt.s32.totalorder %s488_s8, %s488_s8 }
  0xe0   :  { %p495_p5 = por %p494_p4, %p493_p3 }
  0xe2   :  { %p496_p6 = pnand %p495_p5, %p489_p2 }
 0x16d   :  { %v410_v29 = vpop.f32.mrb[0].mxu0 }
 0x16e   :  { %v218_v30 = vpop.f32.mrb[1].mxu0  ;;  %314 = vst [vmem:[#allocation5 + $0x8] sm:$0xff] %v410_v29 }
 0x16f   :  { %313 = vst [vmem:[#allocation5] sm:$0xff] %v218_v30 }
 0x175   :  { %v413_v31 = vpop.f32.mrb[2].mxu0 }
 0x176   :  { %v228_v32 = vpop.f32.mrb[3].mxu0  ;;  %316 = vst [vmem:[#allocation5 + $0x18] sm:$0xff] %v413_v31 }
 0x177   :  { %315 = vst [vmem:[#allocation5 + $0x10] sm:$0xff] %v228_v32 }
 0x17d   :  { %v416_v33 = vpop.f32.mrb[4].mxu0 }
 0x17e   :  { %v238_v34 = vpop.f32.mrb[5].mxu0  ;;  %318 = vst [vmem:[#allocation5 + $0x28] sm:$0xff] %v416_v33 }
 0x17f   :  { %317 = vst [vmem:[#allocation5 + $0x20] sm:$0xff] %v238_v34 }
 0x185   :  { %v419_v35 = vpop.f32.mrb[6].mxu0 }
 0x186   :  { %v248_v36 = vpop.f32.mrb[7].mxu0  ;;  %320 = vst [vmem:[#allocation5 + $0x38] sm:$0xff] %v419_v35 }
 0x187   :  { %319 = vst [vmem:[#allocation5 + $0x30] sm:$0xff] %v248_v36 }
 0x18d   :  { %v422_v37 = vpop.f32.mrb[0].mxu1 }
 0x18e   :  { %v258_v38 = vpop.f32.mrb[1].mxu1  ;;  %322 = vst [vmem:[#allocation5 + $0x48] sm:$0xff] %v422_v37 }
 0x18f   :  { %321 = vst [vmem:[#allocation5 + $0x40] sm:$0xff] %v258_v38 }
 0x195   :  { %v425_v39 = vpop.f32.mrb[2].mxu1 }
 0x196   :  { %v268_v40 = vpop.f32.mrb[3].mxu1  ;;  %324 = vst [vmem:[#allocation5 + $0x58] sm:$0xff] %v425_v39 }
 0x197   :  { %323 = vst [vmem:[#allocation5 + $0x50] sm:$0xff] %v268_v40 }
 0x19d   :  { %v428_v41 = vpop.f32.mrb[4].mxu1 }
 0x19e   :  { %v278_v42 = vpop.f32.mrb[5].mxu1  ;;  %326 = vst [vmem:[#allocation5 + $0x68] sm:$0xff] %v428_v41 }
 0x19f   :  { %325 = vst [vmem:[#allocation5 + $0x60] sm:$0xff] %v278_v42 }
 0x1a5   :  { %v431_v43 = vpop.f32.mrb[6].mxu1 }
 0x1a6   :  { %v288_v44 = vpop.f32.mrb[7].mxu1  ;;  %328 = vst [vmem:[#allocation5 + $0x78] sm:$0xff] %v431_v43 }
 0x1a7   :  { %327 = vst [vmem:[#allocation5 + $0x70] sm:$0xff] %v288_v44 }
 0x1a8   :  { %499 = shalt.err (!%p496_p6)
}
 0x1a9   :  { %s500_s11 = scalar_lea.hbm %s596_s1, 2048 }
 0x1aa   :  { %p501_p7 = scmp.ne.s32.totalorder %s596_s1, %s500_s11  ;;  %p504_p8 = scmp.lt.u32.totalorder %s500_s11, %s596_s1 }
 0x1ac   :  { %p506_p9 = pnand %p504_p8, %p501_p7 }
 0x1ae   :  { %509 = shalt.err (!%p506_p9)
}
 0x1af   :  { %350 = dma.vmem_to_hbm [thread:$0]  %s345_s7, 2048, %s596_s1, [#allocation4], %s517_s19, %s517_s19, %s518_s20  }
 0x1b0   :  { %512 = dma.done.wait [#allocation4], 2048  }
 0x1b1   :  { %513 = vsyncadd [#allocation4], 4294965248 }
 0x1b2   :  { %514 = dma.done.wait [#allocation7], 16  }
 0x1b3   :  { %515 = vsyncadd [#allocation7], 4294967280 }
 0x1b4   :  { %367 = vsyncpa [#allocation3], 1 }
 0x1b5   :  { %368 = vsyncpa [#allocation4], 1 }
 0x1b6   :  { %369 = vsyncpa [#allocation7], 1 }

</bundles_post_ra>
